<compile_context>
chip_gen: v7x
topology: tpu7x:2x2x1
jax: 0.10.0
libtpu: 0.0.40
codegen_flags: <defaults>
</compile_context>

<pallas_src>
import functools

import jax
import jax.numpy as jnp
import numpy as np
from jax.experimental import pallas as pl
from jax.experimental.pallas import tpu as pltpu


def _vmem_budgets():
    """Returns (pipelined-input budget bytes, scoped-vmem limit bytes) per TPU gen."""
    cap = None
    try:
        cap = getattr(pltpu.get_tpu_info(), "vmem_capacity_bytes", None)
    except Exception:
        cap = None
    if cap is None:
        cap = 64 * 1024 * 1024                        # conservative (v7x-sized) fallback
    if cap >= 96 * 1024 * 1024:                       # v5e / v6e: 128 MiB physical VMEM
        return 24 * 1024 * 1024, 64 * 1024 * 1024
    return 8 * 1024 * 1024, 30 * 1024 * 1024          # v7x: 64 MiB physical / 32 MiB scoped


def _row_block(B, itemsize):
    # Match native sublane packing: f32 -> 8, bf16/fp16 -> 16, int8/fp8 -> 32.
    native = {4: 8, 2: 16, 1: 32}.get(itemsize, 8)
    if B % native == 0:
        return native
    return B                                          # full-dim block is always legal


def _dice_single_tile_kernel(x_ref, t_ref, inter_ref, sum_ref):
    # Whole N range in one tile: no accumulator phases, just the two row reductions.
    x = x_ref[...].astype(jnp.float32)
    t = t_ref[...].astype(jnp.float32)
    inter_ref[...] = jnp.sum(x * t, axis=1, keepdims=True)
    sum_ref[...] = jnp.sum(x + t, axis=1, keepdims=True)


def _dice_partials_kernel(x_ref, t_ref, inter_ref, sum_ref, *,
                          n_total, tile_n, tiles_per_split, n_split, mask_any):
    j = pl.program_id(1)

    @pl.when(j == 0)
    def _():
        inter_ref[...] = jnp.zeros_like(inter_ref)
        sum_ref[...] = jnp.zeros_like(sum_ref)

    x = x_ref[...].astype(jnp.float32)
    t = t_ref[...].astype(jnp.float32)

    def accumulate(xv, tv):
        # (R, 1) output-resident accumulators updated with an in-step cross-lane
        # reduce (XLU slot is otherwise idle in this DMA-bound kernel).
        inter_ref[...] += jnp.sum(xv * tv, axis=1, keepdims=True)
        sum_ref[...] += jnp.sum(xv + tv, axis=1, keepdims=True)

    if not mask_any:
        accumulate(x, t)
    else:
        # Global (logical) tile index of this grid step.
        if n_split == 1:
            g = j
        else:
            g = pl.program_id(0) * tiles_per_split + j
        tile_start = g * tile_n
        in_bounds = (tile_start + tile_n) <= n_total

        @pl.when(in_bounds)
        def _():
            accumulate(x, t)

        @pl.when(jnp.logical_not(in_bounds))
        def _():
            # Ragged (or fully out-of-range, clamped) tile: zero invalid lanes.
            lane = jax.lax.broadcasted_iota(jnp.int32, x.shape, dimension=1)
            valid = lane < (n_total - tile_start)      # <= 0 -> whole tile masked off
            accumulate(jnp.where(valid, x, 0.0), jnp.where(valid, t, 0.0))


def dice_loss_pallas(inputs, targets, *, smooth=1.0, alpha=1.0, tile_n=None):
    """Mirrors Dice_Loss.forward: per-sample dice -> mean over batch -> * alpha."""
    assert inputs.shape == targets.shape
    B = inputs.shape[0]
    N = int(np.prod(inputs.shape[1:]))
    x = inputs.reshape(B, N)           # keep original dtype; cast to f32 inside kernel
    t = targets.reshape(B, N)
    itemsize = jnp.dtype(x.dtype).itemsize
    smooth = float(smooth)

    budget, vmem_limit = _vmem_budgets()
    R = _row_block(B, itemsize)
    num_row_blocks = B // R

    if tile_n is None:
        per_col = R * 2 * 2 * itemsize                 # 2 inputs x 2 pipeline buffers
        tile_n = max(128, (budget // per_col) // 128 * 128)
    if tile_n >= N:
        tile_n = N                                     # single full-extent tile
    else:
        tile_n = max(128, (tile_n // 128) * 128)
        tile_n = min(tile_n, N)
    num_n_tiles = pl.cdiv(N, tile_n)

    cost = pl.CostEstimate(flops=4 * B * N, transcendentals=0,
                           bytes_accessed=2 * B * N * itemsize + 8 * B)

    if num_n_tiles == 1:
        inter_parts, sum_parts = pl.pallas_call(
            _dice_single_tile_kernel,
            out_shape=(jax.ShapeDtypeStruct((1, B, 1), jnp.float32),
                       jax.ShapeDtypeStruct((1, B, 1), jnp.float32)),
            grid=(num_row_blocks,),
            in_specs=[pl.BlockSpec((R, N), lambda i: (i, 0)),
                      pl.BlockSpec((R, N), lambda i: (i, 0))],
            out_specs=(pl.BlockSpec((None, R, 1), lambda i: (0, i, 0)),
                       pl.BlockSpec((None, R, 1), lambda i: (0, i, 0))),
            compiler_params=pltpu.CompilerParams(
                dimension_semantics=("parallel",),
                vmem_limit_bytes=vmem_limit),
            cost_estimate=cost,
        )(x, t)
    else:
        # Use the second TensorCore (v7x) when row blocks alone can't feed both cores.
        n_split = 2 if (num_row_blocks == 1 and num_n_tiles >= 2) else 1
        tiles_per_split = pl.cdiv(num_n_tiles, n_split)
        mask_any = (N % tile_n != 0) or (n_split * tiles_per_split != num_n_tiles)

        if n_split == 1:
            def in_map(p, j):
                return (p, j)

            def out_map(p, j):
                return (0, p, 0)
        else:
            last_tile = num_n_tiles - 1

            def in_map(p, j):
                g = p * tiles_per_split + j
                # Clamp: a fully out-of-range tile re-reads the last valid tile and is
                # zero-masked in-kernel, so it contributes nothing.
                return (0, jnp.minimum(g, last_tile))

            def out_map(p, j):
                return (p, 0, 0)

        kernel = functools.partial(
            _dice_partials_kernel,
            n_total=N, tile_n=tile_n,
            tiles_per_split=tiles_per_split, n_split=n_split, mask_any=mask_any)

        inter_parts, sum_parts = pl.pallas_call(
            kernel,
            out_shape=(jax.ShapeDtypeStruct((n_split, B, 1), jnp.float32),
                       jax.ShapeDtypeStruct((n_split, B, 1), jnp.float32)),
            grid=(num_row_blocks * n_split, tiles_per_split),
            in_specs=[pl.BlockSpec((R, tile_n), in_map),
                      pl.BlockSpec((R, tile_n), in_map)],
            out_specs=(pl.BlockSpec((None, R, 1), out_map),
                       pl.BlockSpec((None, R, 1), out_map)),
            compiler_params=pltpu.CompilerParams(
                dimension_semantics=("parallel", "arbitrary"),
                vmem_limit_bytes=vmem_limit),
            cost_estimate=cost,
        )(x, t)

    # Tiny JAX epilogue: combine per-core partials, dice formula, batch mean, alpha.
    inter = jnp.sum(inter_parts[:, :, 0], axis=0)            # (B,)
    denom = jnp.sum(sum_parts[:, :, 0], axis=0) + smooth     # sum_x + sum_t + smooth
    loss = 1.0 - (2.0 * inter + smooth) / denom
    return jnp.mean(loss) * alpha


def dice_loss_ref(inputs, targets, *, smooth=1.0, alpha=1.0):
    """Pure-JAX reference matching the PyTorch module."""
    B = inputs.shape[0]
    x = inputs.reshape(B, -1).astype(jnp.float32)
    t = targets.reshape(B, -1).astype(jnp.float32)
    inter = jnp.sum(x * t, axis=1)
    loss = 1.0 - (2.0 * inter + smooth) / (jnp.sum(x, axis=1) + jnp.sum(t, axis=1) + smooth)
    return jnp.mean(loss) * alpha


if __name__ == "__main__":
    key = jax.random.PRNGKey(0)
    k1, k2, k3, k4, k5, k6, k7, k8 = jax.random.split(key, 8)

    # Case 1: canonical small shape (2, 4, 16, 16), f32 -> single-tile specialized path.
    B, C, H, W = 2, 4, 16, 16
    inputs = jax.nn.sigmoid(jax.random.normal(k1, (B, C, H, W), dtype=jnp.float32))
    targets = (jax.random.uniform(k2, (B, C, H, W)) > 0.5).astype(jnp.float32)
    out = jax.block_until_ready(dice_loss_pallas(inputs, targets, smooth=1.0, alpha=1.0))
    ref = dice_loss_ref(inputs, targets, smooth=1.0, alpha=1.0)
    np.testing.assert_allclose(np.asarray(out), np.asarray(ref), rtol=1e-5, atol=1e-6)

    # Case 2: bf16 inputs, ragged N (N=900, TILE_N=256) -> multi-tile accumulator path,
    # 2-way core split, masked last tile.
    B2, C2, H2, W2 = 3, 4, 15, 15
    inputs2 = jax.nn.sigmoid(jax.random.normal(k3, (B2, C2, H2, W2), dtype=jnp.bfloat16))
    targets2 = (jax.random.uniform(k4, (B2, C2, H2, W2)) > 0.5).astype(jnp.bfloat16)
    out2 = jax.block_until_ready(dice_loss_pallas(inputs2, targets2, smooth=1.0, alpha=1.0,
                                                  tile_n=256))
    ref2 = dice_loss_ref(inputs2, targets2, smooth=1.0, alpha=1.0)
    np.testing.assert_allclose(np.asarray(out2), np.asarray(ref2), rtol=1e-4, atol=1e-5)

    # Case 3: B=16 f32 with TILE_N=512 -> R=8 (dtype-aware), 2 row blocks x 2 N tiles,
    # no masking, no core split.
    B3, C3, H3, W3 = 16, 4, 16, 16
    inputs3 = jax.nn.sigmoid(jax.random.normal(k5, (B3, C3, H3, W3), dtype=jnp.float32))
    targets3 = (jax.random.uniform(k6, (B3, C3, H3, W3)) > 0.5).astype(jnp.float32)
    out3 = jax.block_until_ready(dice_loss_pallas(inputs3, targets3, smooth=1.0, alpha=1.0,
                                                  tile_n=512))
    ref3 = dice_loss_ref(inputs3, targets3, smooth=1.0, alpha=1.0)
    np.testing.assert_allclose(np.asarray(out3), np.asarray(ref3), rtol=1e-5, atol=1e-6)

    # Case 4: odd tile count with core split (N=900, TILE_N=384 -> 3 tiles across 2
    # splits) -> exercises the clamped fully-out-of-range tile + ragged-tile mask.
    B4, C4, H4, W4 = 2, 4, 15, 15
    inputs4 = jax.nn.sigmoid(jax.random.normal(k7, (B4, C4, H4, W4), dtype=jnp.float32))
    targets4 = (jax.random.uniform(k8, (B4, C4, H4, W4)) > 0.5).astype(jnp.float32)
    out4 = jax.block_until_ready(dice_loss_pallas(inputs4, targets4, smooth=1.0, alpha=1.0,
                                                  tile_n=384))
    ref4 = dice_loss_ref(inputs4, targets4, smooth=1.0, alpha=1.0)
    np.testing.assert_allclose(np.asarray(out4), np.asarray(ref4), rtol=1e-5, atol=1e-6)

    print("KERNEL_OK")
</pallas_src>

<mosaic_0001>
module attributes {stable_mosaic.version = 11 : i64} {
  func.func @_dice_single_tile_kernel(%arg0: i32, %arg1: memref<2x1024xf32, #tpu.memory_space<vmem>>, %arg2: memref<2x1024xf32, #tpu.memory_space<vmem>>, %arg3: memref<1x2x1xf32, #tpu.memory_space<vmem>>, %arg4: memref<1x2x1xf32, #tpu.memory_space<vmem>>) attributes {dimension_semantics = [#tpu.dimension_semantics<parallel>], iteration_bounds = array<i64: 1>, scalar_prefetch = 0 : i64, scratch_operands = 0 : i64, tpu.core_type = #tpu.core_type<tc>, window_params = [{transform_indices = @transform_0, window_bounds = array<i64: 2, 1024>}, {transform_indices = @transform_1, window_bounds = array<i64: 2, 1024>}, {transform_indices = @transform_2, window_bounds = array<i64: 1, 2, 1>}, {transform_indices = @transform_3, window_bounds = array<i64: 1, 2, 1>}]} {
    %c0 = arith.constant 0 : index
    %c0_0 = arith.constant 0 : index
    %0 = vector.load %arg1[%c0, %c0_0] : memref<2x1024xf32, #tpu.memory_space<vmem>>, vector<2x1024xf32>
    %c0_1 = arith.constant 0 : index
    %c0_2 = arith.constant 0 : index
    %1 = vector.load %arg2[%c0_1, %c0_2] : memref<2x1024xf32, #tpu.memory_space<vmem>>, vector<2x1024xf32>
    %2 = arith.mulf %0, %1 : vector<2x1024xf32>
    %cst = arith.constant dense<0.000000e+00> : vector<2xf32>
    %3 = vector.multi_reduction <add>, %2, %cst [1] : vector<2x1024xf32> to vector<2xf32>
    %4 = vector.shape_cast %3 : vector<2xf32> to vector<2x1xf32>
    %c0_3 = arith.constant 0 : index
    %c0_4 = arith.constant 0 : index
    %c0_5 = arith.constant 0 : index
    %5 = vector.load %arg3[%c0_3, %c0_4, %c0_5] : memref<1x2x1xf32, #tpu.memory_space<vmem>>, vector<1x2x1xf32>
    %6 = vector.shape_cast %5 : vector<1x2x1xf32> to vector<2x1xf32>
    %7 = vector.shape_cast %4 : vector<2x1xf32> to vector<1x2x1xf32>
    tpu.vector_store %arg3[%c0_3, %c0_4, %c0_5], %7 {strides = array<i32>} : memref<1x2x1xf32, #tpu.memory_space<vmem>>, vector<1x2x1xf32>,
    %8 = arith.addf %0, %1 : vector<2x1024xf32>
    %cst_6 = arith.constant dense<0.000000e+00> : vector<2xf32>
    %9 = vector.multi_reduction <add>, %8, %cst_6 [1] : vector<2x1024xf32> to vector<2xf32>
    %10 = vector.shape_cast %9 : vector<2xf32> to vector<2x1xf32>
    %c0_7 = arith.constant 0 : index
    %c0_8 = arith.constant 0 : index
    %c0_9 = arith.constant 0 : index
    %11 = vector.load %arg4[%c0_7, %c0_8, %c0_9] : memref<1x2x1xf32, #tpu.memory_space<vmem>>, vector<1x2x1xf32>
    %12 = vector.shape_cast %11 : vector<1x2x1xf32> to vector<2x1xf32>
    %13 = vector.shape_cast %10 : vector<2x1xf32> to vector<1x2x1xf32>
    tpu.vector_store %arg4[%c0_7, %c0_8, %c0_9], %13 {strides = array<i32>} : memref<1x2x1xf32, #tpu.memory_space<vmem>>, vector<1x2x1xf32>,
    return
  }
  func.func @transform_0(%arg0: i32) -> (i32, i32) {
    %c0_i32 = arith.constant 0 : i32
    %c0_i32_0 = arith.constant 0 : i32
    return %arg0, %c0_i32 : i32, i32
  }
  func.func @transform_1(%arg0: i32) -> (i32, i32) {
    %c0_i32 = arith.constant 0 : i32
    %c0_i32_0 = arith.constant 0 : i32
    return %arg0, %c0_i32 : i32, i32
  }
  func.func @transform_2(%arg0: i32) -> (i32, i32, i32) {
    %c0_i32 = arith.constant 0 : i32
    %c0_i32_0 = arith.constant 0 : i32
    %c0_i32_1 = arith.constant 0 : i32
    return %c0_i32, %arg0, %c0_i32_0 : i32, i32, i32
  }
  func.func @transform_3(%arg0: i32) -> (i32, i32, i32) {
    %c0_i32 = arith.constant 0 : i32
    %c0_i32_0 = arith.constant 0 : i32
    %c0_i32_1 = arith.constant 0 : i32
    return %c0_i32, %arg0, %c0_i32_0 : i32, i32, i32
  }
}

</mosaic_0001>

<bundles_post_ra>
// kernel: tpu_custom_call.1
= control target key start
LH: loop header
LB: loop body
LE: loop exit
PB: predicated region body
PF: predicated region fallthrough
CT: control target
= control target key end

     0   :  { %9 = vsyncpa [#allocation3], 0  ;;  %s301_s0 = inlined_call_operand.hbm [shape: f32[2,1024], index: 0, kind: input, shape index: {}]   ;;  %s302_s1 = inlined_call_operand.hbm [shape: f32[2,1024], index: 1, kind: input, shape index: {}]   ;;  %s303_s2 = inlined_call_operand.vmem [shape: f32[1,2,1], index: 2, kind: output, shape index: {0}]   ;;  %s304_s3 = inlined_call_operand.vmem [shape: f32[1,2,1], index: 3, kind: output, shape index: {1}]  }
   0x1   :  { %10 = vsyncpa [#allocation5], 0  ;;  %s232_s12 = smov [#allocation2]   ;;  %s233_s14 = smov [#allocation4]  }
   0x2   :  { %s17_s13 = sshll.u32 %s232_s12, 4  ;;  %s27_s15 = sshll.u32 %s233_s14, 4  ;;  %s18_s13 = int_to_ptr.vmem [resolvable:$true] %s17_s13  ;;  %s28_s15 = int_to_ptr.vmem [resolvable:$true] %s27_s15 }
   0x3   :  { %s184_s18 = scalar_lea.hbm %s301_s0, 256 }
   0x4   :  { %p185_p0 = scmp.ne.s32.totalorder %s301_s0, %s184_s18  ;;  %p188_p1 = scmp.lt.u32.totalorder %s184_s18, %s301_s0 }
   0x6   :  { %p190_p2 = pnand %p188_p1, %p185_p0 }
   0x8   :  { %193 = shalt.err (!%p190_p2)
}
   0x9   :  { %s194_s23 = scalar_lea.vmem %s18_s13, 256  ;;  %p199_p4 = scmp.lt.s32.totalorder %s18_s13, %s18_s13 }
   0xa   :  { %p195_p3 = scmp.ne.s32.totalorder %s18_s13, %s194_s23  ;;  %p200_p5 = scmp.lt.s32.totalorder %s194_s23, %s194_s23 }
   0xc   :  { %p201_p6 = por %p200_p5, %p199_p4 }
   0xe   :  { %p202_p7 = pnand %p201_p6, %p195_p3 }
  0x10   :  { %205 = shalt.err (!%p202_p7)
}
  0x11   :  { %20 = dma.hbm_to_vmem [thread:$0]  %s301_s0, 256, %s18_s13, [#allocation3]  }
  0x12   :  { %s206_s28 = scalar_lea.hbm %s302_s1, 256 }
  0x13   :  { %p207_p8 = scmp.ne.s32.totalorder %s302_s1, %s206_s28  ;;  %p210_p9 = scmp.lt.u32.totalorder %s206_s28, %s302_s1 }
  0x15   :  { %p212_p10 = pnand %p210_p9, %p207_p8 }
  0x17   :  { %215 = shalt.err (!%p212_p10)
}
  0x18   :  { %s216_s6 = scalar_lea.vmem %s28_s15, 256  ;;  %p221_p12 = scmp.lt.s32.totalorder %s28_s15, %s28_s15 }
  0x19   :  { %p217_p11 = scmp.ne.s32.totalorder %s28_s15, %s216_s6  ;;  %p222_p13 = scmp.lt.s32.totalorder %s216_s6, %s216_s6 }
  0x1b   :  { %p223_p0 = por %p222_p13, %p221_p12 }
  0x1d   :  { %p224_p1 = pnand %p223_p0, %p217_p11 }
  0x1f   :  { %227 = shalt.err (!%p224_p1)
}
  0x20   :  { %30 = dma.hbm_to_vmem [thread:$0]  %s302_s1, 256, %s28_s15, [#allocation5]  }
  0x21   :  { %228 = dma.done.wait [#allocation3], 256  }
  0x22   :  { %229 = vsyncadd [#allocation3], 4294967040 }
  0x23   :  { %230 = dma.done.wait [#allocation5], 256  }
  0x24   :  { %231 = vsyncadd [#allocation5], 4294967040  ;;  %v49_v0 = vlaneseq  ;;  %v234_v1 = vmov 1983009808   ;;  %v37_v6 = vld [vmem:[#allocation2] sm:$0xff]  ;;  %v38_v7 = vld [vmem:[#allocation2 + $0x8] sm:$0xff] }
  0x25   :  { %v47_v2 = vunpack.c.l.s4 %v234_v1  ;;  %v39_v8 = vld [vmem:[#allocation4] sm:$0xff]  ;;  %v40_v9 = vld [vmem:[#allocation4 + $0x8] sm:$0xff]  ;;  %vm87_vm0 = vcmask 1041408   ;;  %vm105_vm1 = vcmask 1024  }
  0x26   :  { %v50_v3 = vshrl.u32 %v49_v0, 7  ;;  %v41_v10 = vmul.f32 %v39_v8, %v37_v6  ;;  %v107_v11 = vadd.f32 %v39_v8, %v37_v6  ;;  %v42_v12 = vmul.f32 %v40_v9, %v38_v7 }
  0x27   :  { %v48_v4 = vunpack.c.0.s8 %v47_v2  ;;  %v108_v19 = vadd.f32 %v40_v9, %v38_v7 }
  0x28   :  { %v45_v13 = vcombine.high %v41_v10, %v41_v10  ;;  %v111_v15 = vcombine.high %v107_v11, %v107_v11  ;;  %v62_v17 = vcombine.high %v42_v12, %v42_v12 }
  0x29   :  { %v51_v5 = vsub.s32 %v48_v4, %v50_v3  ;;  %v128_v30 = vcombine.high %v108_v19, %v108_v19 }
  0x2b   :  { %v52_v14 = vrot.slane %v41_v10, %v51_v5  ;;  %v118_v16 = vrot.slane %v107_v11, %v51_v5  ;;  %v69_v18 = vrot.slane %v42_v12, %v51_v5  ;;  %v59_v20 = vrot.slane %v45_v13, %v51_v5 }
  0x2c   :  { %v125_v23 = vrot.slane %v111_v15, %v51_v5  ;;  %v135_v31 = vrot.slane %v108_v19, %v51_v5  ;;  %v76_v32 = vrot.slane %v62_v17, %v51_v5  ;;  %v142_v42 = vrot.slane %v128_v30, %v51_v5 }
  0x2d   :  { %v60_v21 = vcombine.high %v52_v14, %v52_v14  ;;  %v88_v22 = vsel %vm87_vm0, %v52_v14, 0.0  ;;  %v126_v24 = vcombine.high %v118_v16, %v118_v16  ;;  %v61_v25 = vcombine.high %v59_v20, %v59_v20 }
  0x2e   :  { %v91_v27 = vsel %vm87_vm0, %v59_v20, 0.0  ;;  %v127_v29 = vcombine.high %v125_v23, %v125_v23  ;;  %v77_v33 = vcombine.high %v69_v18, %v69_v18  ;;  %v153_v35 = vsel %vm87_vm0, %v118_v16, 0.0 }
  0x2f   :  { %v89_v26 = vsel %vm87_vm0, %v60_v21, 0.0  ;;  %v93_v34 = vsel %vm87_vm0, %v61_v25, 0.0  ;;  %v154_v37 = vsel %vm87_vm0, %v126_v24, 0.0  ;;  %v156_v38 = vsel %vm87_vm0, %v125_v23, 0.0 }
  0x30   :  { %v90_v28 = vadd.f32 %v89_v26, %v88_v22  ;;  %v95_v39 = vsel %vm87_vm0, %v69_v18, 0.0  ;;  %v155_v40 = vadd.f32 %v154_v37, %v153_v35  ;;  %v143_v43 = vcombine.high %v135_v31, %v135_v31 }
  0x31   :  { %v158_v44 = vsel %vm87_vm0, %v127_v29, 0.0  ;;  %v78_v45 = vcombine.high %v76_v32, %v76_v32  ;;  %v97_v46 = vsel %vm87_vm0, %v77_v33, 0.0  ;;  %v160_v49 = vsel %vm87_vm0, %v135_v31, 0.0 }
  0x32   :  { %v92_v36 = vadd.f32 %v91_v27, %v90_v28  ;;  %v157_v47 = vadd.f32 %v156_v38, %v155_v40  ;;  %v99_v50 = vsel %vm87_vm0, %v76_v32, 0.0  ;;  %v144_v53 = vcombine.high %v142_v42, %v142_v42 }
  0x33   :  { %v162_v54 = vsel %vm87_vm0, %v143_v43, 0.0  ;;  %v101_v55 = vsel %vm87_vm0, %v78_v45, 0.0  ;;  %v164_v58 = vsel %vm87_vm0, %v142_v42, 0.0 }
  0x34   :  { %v94_v41 = vadd.f32 %v93_v34, %v92_v36  ;;  %v159_v51 = vadd.f32 %v158_v44, %v157_v47  ;;  %v166_v61 = vsel %vm87_vm0, %v144_v53, 0.0 }
  0x36   :  { %v96_v48 = vadd.f32 %v95_v39, %v94_v41  ;;  %v161_v56 = vadd.f32 %v160_v49, %v159_v51 }
  0x38   :  { %v98_v52 = vadd.f32 %v97_v46, %v96_v48  ;;  %v163_v59 = vadd.f32 %v162_v54, %v161_v56 }
  0x3a   :  { %v100_v57 = vadd.f32 %v99_v50, %v98_v52  ;;  %v165_v62 = vadd.f32 %v164_v58, %v163_v59 }
  0x3c   :  { %v102_v60 = vadd.f32 %v101_v55, %v100_v57  ;;  %v167_v63 = vadd.f32 %v166_v61, %v165_v62 }
  0x3e   :  { %103 = vadd.xlane.f32.xlu0 %v102_v60 }
  0x42   :  { %168 = vadd.xlane.f32.xlu0 %v167_v63 }
  0xcb   :  { %v104_v0 = vpop.xlane.xlu0 %103 }
  0xcc   :  { %106 = vst.msk [vmem:[%s303_s2] sm:$0x3] %vm105_vm1, %v104_v0 }
  0xcf   :  { %v169_v1 = vpop.xlane.xlu0 %168 }
  0xd0   :  { %170 = vst.msk [vmem:[%s304_s3] sm:$0x3] %vm105_vm1, %v169_v1 }
  0xd1   :  { %179 = vsyncpa [#allocation3], 1 }
  0xd2   :  { %180 = vsyncpa [#allocation5], 1 }

</bundles_post_ra>
